<compile_context>
chip_gen: v7x
topology: tpu7x:2x2x1
jax: 0.10.0
libtpu: 0.0.40
codegen_flags: <defaults>
</compile_context>

<pallas_src>
import functools

import jax
import jax.numpy as jnp
from jax.experimental import pallas as pl
from jax.experimental.pallas import tpu as pltpu


def _round_up(x, m):
    return (x + m - 1) // m * m


def _vmem_cap_bytes():
    """Physical VMEM of the local TPU, with a v7x-safe fallback."""
    try:
        return int(pltpu.get_tpu_info().vmem_capacity_bytes)
    except Exception:
        return 64 * 1024 * 1024


def _tile_sizes(B, dim_in, dim_out, out_bytes):
    """Pick tile sizes and padded array sizes (all Python ints, trace-time)."""
    n_pad = _round_up(dim_out, 128)            # lane-dense output stores
    vmem_budget = int(_vmem_cap_bytes() * 0.7)  # headroom for compiler scratch

    # Batch tile: full-extent block for tiny batches (no padding at all), else a
    # multiple of 8 (f32 sublanes), aiming for >= 2 batch tiles so a second
    # TensorCore (v7x) has work; capped at 256 (multiple of 128 for the MXU).
    if B <= 8:
        tm = B
    else:
        tm = min(256, _round_up(B, 8))
        if B >= 16 and _round_up(B, tm) // tm < 2:
            tm = _round_up((B + 1) // 2, 8)
    b_pad = _round_up(B, tm)

    # Contraction: collapse to a single K tile when it fits (the common Embed
    # case dim_in=1024); otherwise tile K and shrink tk until it fits VMEM.
    k_unit = _round_up(dim_in, 128)
    single_k_bytes = (2 * tm * k_unit * 4          # x tiles (f32, double-buffered)
                      + 2 * k_unit * n_pad * 2     # weight (bf16)
                      + 2 * n_pad * 4              # bias
                      + 2 * tm * n_pad * out_bytes)
    if k_unit <= 4096 and single_k_bytes <= vmem_budget:
        tk = k_unit
    else:
        tk = 512
        while tk > 128 and (2 * tm * tk * 4 + 2 * tk * n_pad * 2
                            + 2 * n_pad * 4 + 2 * tm * n_pad * out_bytes
                            + tm * n_pad * 4) > vmem_budget:
            tk //= 2
    k_pad = _round_up(dim_in, tk)
    return tm, tk, b_pad, k_pad, n_pad, vmem_budget


def _embed_kernel_single(x_ref, w_ref, b_ref, o_ref):
    """One (tm, n_pad) output tile; full contraction in a single MXU pass.
    x is cast to bf16 in-kernel (saves a wrapper-side HBM copy of x)."""
    y = jnp.dot(x_ref[...].astype(jnp.bfloat16), w_ref[...],
                preferred_element_type=jnp.float32) + b_ref[...]
    inv = jax.lax.rsqrt(jnp.sum(y * y, axis=1, keepdims=True))   # EUP rsqrt
    o_ref[...] = (y * inv).astype(o_ref.dtype)


def _embed_kernel_ktiled(x_ref, w_ref, b_ref, o_ref, acc_ref):
    """Large-dim_in path: K streamed along grid axis 1, f32 accumulator."""
    k = pl.program_id(1)

    @pl.when(k == 0)
    def _():
        acc_ref[...] = jnp.zeros_like(acc_ref)

    acc_ref[...] += jnp.dot(x_ref[...].astype(jnp.bfloat16), w_ref[...],
                            preferred_element_type=jnp.float32)

    @pl.when(k == pl.num_programs(1) - 1)
    def _():
        y = acc_ref[...] + b_ref[...]
        inv = jax.lax.rsqrt(jnp.sum(y * y, axis=1, keepdims=True))
        o_ref[...] = (y * inv).astype(o_ref.dtype)


def prepare_embed_params(w, b, *, k_pad, n_pad):
    """One-time parameter prep (amortized at init): transpose PyTorch-layout
    weight to (dim_in, dim_out), cast the MXU operand to bf16, and ZERO-pad to
    (k_pad, n_pad).  Zero padding is required for correctness: the L2 norm is
    taken over all n_pad columns, so padded columns must contribute 0."""
    dim_out, dim_in = w.shape
    w_t = jnp.transpose(w).astype(jnp.bfloat16)                  # (dim_in, dim_out)
    w_t = jnp.pad(w_t, ((0, k_pad - dim_in), (0, n_pad - dim_out)))
    b2d = jnp.pad(b.astype(jnp.float32), (0, n_pad - dim_out)).reshape(1, n_pad)
    return w_t, b2d


@functools.partial(jax.jit, static_argnames=("dim_out", "out_dtype"))
def embed_forward(x, w_t_padded, b2d_padded, *, dim_out, out_dtype=jnp.float32):
    """x: (B, C, H, W) or (B, dim_in) f32; w_t_padded: (k_pad, n_pad) bf16;
    b2d_padded: (1, n_pad) f32.  Returns (B, dim_out) in out_dtype."""
    B = x.shape[0]
    x_flat = x.reshape(B, -1)
    dim_in = x_flat.shape[1]
    out_bytes = jnp.dtype(out_dtype).itemsize
    tm, tk, b_pad, k_pad, n_pad, vmem_budget = _tile_sizes(B, dim_in, dim_out,
                                                           out_bytes)
    assert w_t_padded.shape == (k_pad, n_pad), (w_t_padded.shape, (k_pad, n_pad))
    assert b2d_padded.shape == (1, n_pad)

    # x stays f32 in HBM (bf16 cast is in-kernel).  Pad only if the blocks do
    # not cover the array exactly; K padding must be zeros (exact matmul),
    # batch padding rows are sliced off after the call.
    if b_pad != B or k_pad != dim_in:
        x_in = jnp.pad(x_flat, ((0, b_pad - B), (0, k_pad - dim_in)))
    else:
        x_in = x_flat

    cost = pl.CostEstimate(
        flops=2 * b_pad * k_pad * n_pad,
        transcendentals=b_pad,
        bytes_accessed=(b_pad * k_pad * 4 + k_pad * n_pad * 2
                        + n_pad * 4 + b_pad * n_pad * out_bytes),
    )

    if tk == k_pad:
        # --- single-K path: one dot + epilogue per batch tile -------------
        grid = (b_pad // tm,)
        in_specs = [
            pl.BlockSpec((tm, k_pad), lambda i: (i, 0)),     # x tile (f32)
            pl.BlockSpec((k_pad, n_pad), lambda i: (0, 0)),  # weight: constant index
                                                             #   -> DMA'd once, VMEM-resident
            pl.BlockSpec((1, n_pad), lambda i: (0, 0)),      # bias: resident
        ]
        out_spec = pl.BlockSpec((tm, n_pad), lambda i: (i, 0))
        scratch = []
        kernel = _embed_kernel_single
        dim_sem = ("parallel",)
        vmem_bytes = (2 * tm * k_pad * 4 + 2 * k_pad * n_pad * 2
                      + 2 * n_pad * 4 + 2 * tm * n_pad * out_bytes)
    else:
        # --- K-tiled path (large dim_in): accumulator + init/finalize -----
        grid = (b_pad // tm, k_pad // tk)
        in_specs = [
            pl.BlockSpec((tm, tk), lambda i, k: (i, k)),     # x tile (f32)
            pl.BlockSpec((tk, n_pad), lambda i, k: (k, 0)),  # weight tile
                                                             #   (re-streamed per batch tile)
            pl.BlockSpec((1, n_pad), lambda i, k: (0, 0)),   # bias: resident
        ]
        out_spec = pl.BlockSpec((tm, n_pad), lambda i, k: (i, 0))
        scratch = [pltpu.VMEM((tm, n_pad), jnp.float32)]
        kernel = _embed_kernel_ktiled
        dim_sem = ("parallel", "arbitrary")
        vmem_bytes = (2 * tm * tk * 4 + 2 * tk * n_pad * 2
                      + 2 * n_pad * 4 + 2 * tm * n_pad * out_bytes
                      + tm * n_pad * 4)

    vmem_limit = min(max(2 * vmem_bytes, 8 * 1024 * 1024), vmem_budget)

    out = pl.pallas_call(
        kernel,
        out_shape=jax.ShapeDtypeStruct((b_pad, n_pad), out_dtype),
        grid_spec=pltpu.PrefetchScalarGridSpec(
            num_scalar_prefetch=0,
            grid=grid,
            in_specs=in_specs,
            out_specs=out_spec,
            scratch_shapes=scratch,
        ),
        compiler_params=pltpu.CompilerParams(
            dimension_semantics=dim_sem,
            vmem_limit_bytes=vmem_limit,
        ),
        cost_estimate=cost,
    )(x_in, w_t_padded, b2d_padded)

    return out[:B, :dim_out]


def reference_forward_f32(x, w, b):
    """Pure-JAX f32 reference matching the PyTorch module exactly."""
    B = x.shape[0]
    xf = x.reshape(B, -1).astype(jnp.float32)
    y = jnp.dot(xf, w.T.astype(jnp.float32),
                precision=jax.lax.Precision.HIGHEST) + b.astype(jnp.float32)
    norm = jnp.sqrt(jnp.sum(y ** 2, axis=1, keepdims=True))
    return y / norm


def reference_forward_bf16(x, w, b):
    """Reference with the kernel's operand precision (bf16 operands, f32 acc)."""
    B = x.shape[0]
    xf = x.reshape(B, -1).astype(jnp.bfloat16)
    wt = jnp.transpose(w).astype(jnp.bfloat16)
    y = jnp.dot(xf, wt, preferred_element_type=jnp.float32) + b.astype(jnp.float32)
    norm = jnp.sqrt(jnp.sum(y ** 2, axis=1, keepdims=True))
    return y / norm


if __name__ == "__main__":
    # Shapes consistent with Embed defaults: dim_in = 4*16*16 = 1024, dim_out = 128.
    B, C, H, W = 2, 4, 16, 16
    dim_in, dim_out = C * H * W, 128

    key = jax.random.PRNGKey(0)
    kx, kw, kb = jax.random.split(key, 3)

    x = jax.random.normal(kx, (B, C, H, W), dtype=jnp.float32)
    # Deterministic synthetic parameters (emulating nn.Linear's uniform init range).
    bound = 1.0 / (dim_in ** 0.5)
    w = jax.random.uniform(kw, (dim_out, dim_in), minval=-bound, maxval=bound,
                           dtype=jnp.float32)
    b = jax.random.uniform(kb, (dim_out,), minval=-bound, maxval=bound,
                           dtype=jnp.float32)

    # One-time parameter prep (pre-transpose + bf16 cast + zero-padding).
    _, _, _, k_pad, n_pad, _ = _tile_sizes(B, dim_in, dim_out,
                                           jnp.dtype(jnp.float32).itemsize)
    w_t, b2d = prepare_embed_params(w, b, k_pad=k_pad, n_pad=n_pad)

    out = embed_forward(x, w_t, b2d, dim_out=dim_out)
    out = jax.block_until_ready(out)
    assert out.shape == (B, dim_out)

    # Tight check vs a reference using the same operand precision as the kernel.
    ref_bf16 = reference_forward_bf16(x, w, b)
    assert jnp.allclose(out, ref_bf16, atol=2e-3, rtol=2e-3), \
        "mismatch vs bf16-operand reference"
    # Looser check vs the exact f32 PyTorch-equivalent semantics.
    ref_f32 = reference_forward_f32(x, w, b)
    assert jnp.allclose(out, ref_f32, atol=2e-2, rtol=2e-2), \
        "mismatch vs f32 reference"

    print("KERNEL_OK")
</pallas_src>

<mosaic_0001>
module attributes {stable_mosaic.version = 11 : i64} {
  func.func @_embed_kernel_single(%arg0: i32, %arg1: memref<2x1024xf32, #tpu.memory_space<vmem>>, %arg2: memref<1024x128xbf16, #tpu.memory_space<vmem>>, %arg3: memref<1x128xf32, #tpu.memory_space<vmem>>, %arg4: memref<2x128xf32, #tpu.memory_space<vmem>>) attributes {dimension_semantics = [#tpu.dimension_semantics<parallel>], iteration_bounds = array<i64: 1>, scalar_prefetch = 0 : i64, scratch_operands = 0 : i64, tpu.core_type = #tpu.core_type<tc>, window_params = [{transform_indices = @transform_0, window_bounds = array<i64: 2, 1024>}, {pipeline_mode = #tpu.pipeline_mode<synchronous>, transform_indices = @transform_1, window_bounds = array<i64: 1024, 128>}, {pipeline_mode = #tpu.pipeline_mode<synchronous>, transform_indices = @transform_2, window_bounds = array<i64: 1, 128>}, {transform_indices = @transform_3, window_bounds = array<i64: 2, 128>}]} {
    %c0 = arith.constant 0 : index
    %c0_0 = arith.constant 0 : index
    %0 = vector.load %arg1[%c0, %c0_0] : memref<2x1024xf32, #tpu.memory_space<vmem>>, vector<2x1024xf32>
    %1 = arith.truncf %0 : vector<2x1024xf32> to vector<2x1024xbf16>
    %c0_1 = arith.constant 0 : index
    %c0_2 = arith.constant 0 : index
    %2 = vector.load %arg2[%c0_1, %c0_2] : memref<1024x128xbf16, #tpu.memory_space<vmem>>, vector<1024x128xbf16>
    %cst = arith.constant dense<0.000000e+00> : vector<2x128xf32>
    %3 = tpu.matmul %1, %2, %cst {dimension_numbers = #tpu.dot_dimension_numbers<[1], [0], [0], [1], [0, 0, 1, 1], [], []>} : vector<2x1024xbf16>, vector<1024x128xbf16>, vector<2x128xf32> -> vector<2x128xf32>
    %c0_3 = arith.constant 0 : index
    %c0_4 = arith.constant 0 : index
    %4 = vector.load %arg3[%c0_3, %c0_4] : memref<1x128xf32, #tpu.memory_space<vmem>>, vector<1x128xf32>
    %5 = vector.broadcast %4 : vector<1x128xf32> to vector<2x128xf32>
    %6 = arith.addf %3, %5 : vector<2x128xf32>
    %7 = arith.mulf %6, %6 : vector<2x128xf32>
    %cst_5 = arith.constant dense<0.000000e+00> : vector<2xf32>
    %8 = vector.multi_reduction <add>, %7, %cst_5 [1] : vector<2x128xf32> to vector<2xf32>
    %9 = vector.shape_cast %8 : vector<2xf32> to vector<2x1xf32>
    %10 = math.rsqrt %9 : vector<2x1xf32>
    %11 = vector.broadcast %10 : vector<2x1xf32> to vector<2x128xf32>
    %12 = arith.mulf %6, %11 : vector<2x128xf32>
    %c0_6 = arith.constant 0 : index
    %c0_7 = arith.constant 0 : index
    %13 = vector.load %arg4[%c0_6, %c0_7] : memref<2x128xf32, #tpu.memory_space<vmem>>, vector<2x128xf32>
    tpu.vector_store %arg4[%c0_6, %c0_7], %12 {strides = array<i32>} : memref<2x128xf32, #tpu.memory_space<vmem>>, vector<2x128xf32>,
    return
  }
  func.func @transform_0(%arg0: i32) -> (i32, i32) {
    %c0_i32 = arith.constant 0 : i32
    %c0_i32_0 = arith.constant 0 : i32
    return %arg0, %c0_i32 : i32, i32
  }
  func.func @transform_1(%arg0: i32) -> (i32, i32) {
    %c0_i32 = arith.constant 0 : i32
    %c0_i32_0 = arith.constant 0 : i32
    %c0_i32_1 = arith.constant 0 : i32
    return %c0_i32, %c0_i32_0 : i32, i32
  }
  func.func @transform_2(%arg0: i32) -> (i32, i32) {
    %c0_i32 = arith.constant 0 : i32
    %c0_i32_0 = arith.constant 0 : i32
    %c0_i32_1 = arith.constant 0 : i32
    return %c0_i32, %c0_i32_0 : i32, i32
  }
  func.func @transform_3(%arg0: i32) -> (i32, i32) {
    %c0_i32 = arith.constant 0 : i32
    %c0_i32_0 = arith.constant 0 : i32
    return %arg0, %c0_i32 : i32, i32
  }
}

</mosaic_0001>

<bundles_post_ra>
// kernel: embed_forward.1
= control target key start
LH: loop header
LB: loop body
LE: loop exit
PB: predicated region body
PF: predicated region fallthrough
CT: control target
= control target key end

     0   :  { %8 = vsyncpa [#allocation3], 0  ;;  %s1124_s0 = inlined_call_operand.vmem [shape: f32[2,1024], index: 0, kind: input, shape index: {}]   ;;  %s1125_s1 = inlined_call_operand.hbm [shape: bf16[1024,128], index: 1, kind: input, shape index: {}]   ;;  %s1126_s2 = inlined_call_operand.vmem [shape: f32[1,128], index: 2, kind: input, shape index: {}]   ;;  %s1127_s3 = inlined_call_operand.hbm [shape: f32[2,128], index: 3, kind: output, shape index: {}]  }
   0x1   :  { %9 = vsyncpa [#allocation4], 0  ;;  %s1060_s12 = smov [#allocation2]   ;;  %s1012_s16 = scalar_lea.hbm %s1125_s1, 8192 }
   0x2   :  { %s17_s13 = sshll.u32 %s1060_s12, 4  ;;  %p1013_p0 = scmp.ne.s32.totalorder %s1125_s1, %s1012_s16  ;;  %s18_s13 = int_to_ptr.vmem [resolvable:$true] %s17_s13 }
   0x3   :  { %p1016_p1 = scmp.lt.u32.totalorder %s1012_s16, %s1125_s1 }
   0x5   :  { %p1018_p2 = pnand %p1016_p1, %p1013_p0 }
   0x7   :  { %1021 = shalt.err (!%p1018_p2)
}
   0x8   :  { %s1022_s21 = scalar_lea.vmem %s18_s13, 8192  ;;  %p1027_p4 = scmp.lt.s32.totalorder %s18_s13, %s18_s13 }
   0x9   :  { %p1023_p3 = scmp.ne.s32.totalorder %s18_s13, %s1022_s21  ;;  %p1028_p5 = scmp.lt.s32.totalorder %s1022_s21, %s1022_s21 }
   0xb   :  { %p1029_p6 = por %p1028_p5, %p1027_p4 }
   0xd   :  { %p1030_p7 = pnand %p1029_p6, %p1023_p3 }
   0xf   :  { %1033 = shalt.err (!%p1030_p7)
}
  0x10   :  { %s1061_s22 = smov 64   ;;  %s1062_s23 = smov 4  }
  0x11   :  { %23 = dma.hbm_to_vmem [thread:$0]  %s1125_s1, 8192, %s18_s13, [#allocation3], %s1061_s22, %s1061_s22, %s1062_s23  }
  0x12   :  { %1056 = dma.done.wait [#allocation3], 8192  }
  0x13   :  { %1057 = vsyncadd [#allocation3], 4294959104  ;;  %v944_v0 = vld [vmem:[#allocation2 + $0x40] sm:$0xff]   ;;  %v948_v4 = vld [vmem:[#allocation2 + $0x48] sm:$0xff]   ;;  %v1063_v22 = vmov 1983009808   ;;  %v38_v24 = vlaneseq }
  0x14   :  { %v945_v1 = vld [vmem:[#allocation2 + $0xc0] sm:$0xff]   ;;  %851 = vmatprep.subr.bf16.mxu0 %v944_v0  ;;  %v949_v5 = vld [vmem:[#allocation2 + $0xc8] sm:$0xff]   ;;  %v952_v8 = vld [vmem:[#allocation2 + $0x50] sm:$0xff]   ;;  %v36_v23 = vunpack.c.l.s4 %v1063_v22  ;;  %vm764_vm0 = vcmask 1041408  }
  0x15   :  { %v946_v2 = vld [vmem:[#allocation2] sm:$0xff]   ;;  %873 = vmatprep.subr.bf16.mxu1 %v945_v1  ;;  %v950_v6 = vld [vmem:[#allocation2 + $0x8] sm:$0xff]   ;;  %v953_v9 = vld [vmem:[#allocation2 + $0xd0] sm:$0xff]   ;;  %v39_v30 = vshrl.u32 %v38_v24, 7 }
  0x16   :  { %v947_v3 = vld [vmem:[#allocation2 + $0x80] sm:$0xff]   ;;  %852 = vmatpush3.bf16.msra.mxu0 %v946_v2  ;;  %v951_v7 = vld [vmem:[#allocation2 + $0x88] sm:$0xff]   ;;  %v954_v10 = vld [vmem:[#allocation2 + $0x10] sm:$0xff]   ;;  %v37_v29 = vunpack.c.0.s8 %v36_v23 }
  0x17   :  { %874 = vmatpush3.bf16.msra.mxu1 %v947_v3  ;;  %853 = vmatprep.subr.bf16.mxu0 %v948_v4  ;;  %v955_v11 = vld [vmem:[#allocation2 + $0x90] sm:$0xff]   ;;  %v956_v12 = vld [vmem:[#allocation2 + $0x58] sm:$0xff]   ;;  %v960_v16 = vld [vmem:[#allocation2 + $0x60] sm:$0xff]  }
  0x18   :  { %875 = vmatprep.subr.bf16.mxu1 %v949_v5  ;;  %v957_v13 = vld [vmem:[#allocation2 + $0xd8] sm:$0xff]   ;;  %v961_v17 = vld [vmem:[#allocation2 + $0xe0] sm:$0xff]   ;;  %v964_v20 = vld [vmem:[#allocation2 + $0x68] sm:$0xff]   ;;  %v1097_v35 = vsub.s32 %v37_v29, %v39_v30 }
  0x19   :  { %v958_v14 = vld [vmem:[#allocation2 + $0x18] sm:$0xff]   ;;  %v962_v18 = vld [vmem:[#allocation2 + $0x20] sm:$0xff]   ;;  %v965_v21 = vld [vmem:[#allocation2 + $0xe8] sm:$0xff]  }
  0x1a   :  { %854 = vmatpush3.bf16.msra.mxu0 %v950_v6  ;;  %v959_v15 = vld [vmem:[#allocation2 + $0x98] sm:$0xff]   ;;  %v963_v19 = vld [vmem:[#allocation2 + $0xa0] sm:$0xff]   ;;  %v966_v25 = vld [vmem:[#allocation2 + $0x28] sm:$0xff]  }
  0x1b   :  { %876 = vmatpush3.bf16.msra.mxu1 %v951_v7  ;;  %855 = vmatprep.subr.bf16.mxu0 %v952_v8  ;;  %v967_v26 = vld [vmem:[#allocation2 + $0xa8] sm:$0xff]   ;;  %v968_v27 = vld [vmem:[#allocation2 + $0x70] sm:$0xff]   ;;  %v972_v33 = vld [vmem:[#allocation2 + $0x78] sm:$0xff]  }
  0x1c   :  { %877 = vmatprep.subr.bf16.mxu1 %v953_v9  ;;  %v969_v28 = vld [vmem:[#allocation2 + $0xf0] sm:$0xff]   ;;  %v973_v34 = vld [vmem:[#allocation2 + $0xf8] sm:$0xff]   ;;  %v30_v38 = vld [vmem:[%s1124_s0] sm:$0xff] }
  0x1d   :  { %v970_v31 = vld [vmem:[#allocation2 + $0x30] sm:$0xff]   ;;  %v974_v36 = vld [vmem:[#allocation2 + $0x38] sm:$0xff]   ;;  %v41_v39 = vrot.slane %v30_v38, %v1097_v35  ;;  %v34_v40 = vcombine.high %v30_v38, %v30_v38  ;;  %v977_v41 = vld [vmem:[#allocation2 + $0x140] sm:$0xff]  }
  0x1e   :  { %856 = vmatpush3.bf16.msra.mxu0 %v954_v10  ;;  %v971_v32 = vld [vmem:[#allocation2 + $0xb0] sm:$0xff]   ;;  %v975_v37 = vld [vmem:[#allocation2 + $0xb8] sm:$0xff]   ;;  %v978_v42 = vld [vmem:[#allocation2 + $0x1c0] sm:$0xff]  }
  0x1f   :  { %878 = vmatpush3.bf16.msra.mxu1 %v955_v11  ;;  %857 = vmatprep.subr.bf16.mxu0 %v956_v12  ;;  %v49_v43 = vcombine.high %v41_v39, %v41_v39  ;;  %v48_v44 = vrot.slane %v34_v40, %v1097_v35  ;;  %v76_v45 = vpack.c.bf16 %v41_v39, %v41_v39  ;;  %v979_v48 = vld [vmem:[#allocation2 + $0x100] sm:$0xff]   ;;  %v981_v50 = vld [vmem:[#allocation2 + $0x148] sm:$0xff]   ;;  %v985_v55 = vld [vmem:[#allocation2 + $0x150] sm:$0xff]  }
  0x20   :  { %879 = vmatprep.subr.bf16.mxu1 %v957_v13  ;;  %v980_v52 = vld [vmem:[#allocation2 + $0x180] sm:$0xff]   ;;  %v982_v53 = vld [vmem:[#allocation2 + $0x1c8] sm:$0xff]   ;;  %v986_v57 = vld [vmem:[#allocation2 + $0x1d0] sm:$0xff]  }
  0x21   :  { %v77_v46 = vpack.c.bf16 %v49_v43, %v49_v43  ;;  %v50_v47 = vcombine.high %v48_v44, %v48_v44  ;;  %v78_v49 = vpack.c.bf16 %v48_v44, %v48_v44  ;;  %v983_v54 = vld [vmem:[#allocation2 + $0x108] sm:$0xff]   ;;  %v987_v58 = vld [vmem:[#allocation2 + $0x110] sm:$0xff]   ;;  %v989_v59 = vld [vmem:[#allocation2 + $0x158] sm:$0xff]  }
  0x22   :  { %858 = vmatpush3.bf16.msra.mxu0 %v958_v14  ;;  %v984_v56 = vld [vmem:[#allocation2 + $0x188] sm:$0xff]   ;;  %v988_v60 = vld [vmem:[#allocation2 + $0x190] sm:$0xff]   ;;  %v990_v61 = vld [vmem:[#allocation2 + $0x1d8] sm:$0xff]  }
  0x23   :  { %880 = vmatpush3.bf16.msra.mxu1 %v959_v15  ;;  %859 = vmatprep.subr.bf16.mxu0 %v960_v16  ;;  %v79_v51 = vpack.c.bf16 %v50_v47, %v50_v47  ;;  %v991_v62 = vld [vmem:[#allocation2 + $0x118] sm:$0xff]   ;;  %v993_v63 = vld [vmem:[#allocation2 + $0x160] sm:$0xff]   ;;  %v997_v3 = vld [vmem:[#allocation2 + $0x168] sm:$0xff]  }
  0x24   :  { %881 = vmatprep.subr.bf16.mxu1 %v961_v17  ;;  %635 = vmatprep.mubr.bf16.mxu0 %v77_v46  ;;  %v992_v0 = vld [vmem:[#allocation2 + $0x198] sm:$0xff]   ;;  %v994_v1 = vld [vmem:[#allocation2 + $0x1e0] sm:$0xff]   ;;  %v998_v5 = vld [vmem:[#allocation2 + $0x1e8] sm:$0xff]  }
  0x25   :  { %675 = vmatprep.mubr.bf16.mxu1 %v79_v51  ;;  %v995_v2 = vld [vmem:[#allocation2 + $0x120] sm:$0xff]   ;;  %v999_v6 = vld [vmem:[#allocation2 + $0x128] sm:$0xff]   ;;  %v1001_v7 = vld [vmem:[#allocation2 + $0x170] sm:$0xff]  }
  0x26   :  { %860 = vmatpush3.bf16.msra.mxu0 %v962_v18  ;;  %v996_v4 = vld [vmem:[#allocation2 + $0x1a0] sm:$0xff]   ;;  %v1000_v8 = vld [vmem:[#allocation2 + $0x1a8] sm:$0xff]   ;;  %v1002_v9 = vld [vmem:[#allocation2 + $0x1f0] sm:$0xff]  }
  0x27   :  { %882 = vmatpush3.bf16.msra.mxu1 %v963_v19  ;;  %861 = vmatprep.subr.bf16.mxu0 %v964_v20  ;;  %v1003_v10 = vld [vmem:[#allocation2 + $0x130] sm:$0xff]   ;;  %v1005_v11 = vld [vmem:[#allocation2 + $0x178] sm:$0xff]   ;;  %v31_v14 = vld [vmem:[%s1124_s0 + $0x8] sm:$0xff] }
  0x28   :  { %883 = vmatprep.subr.bf16.mxu1 %v965_v21  ;;  %v1004_v12 = vld [vmem:[#allocation2 + $0x1b0] sm:$0xff]   ;;  %v1006_v13 = vld [vmem:[#allocation2 + $0x1f8] sm:$0xff]   ;;  %v58_v16 = vrot.slane %v31_v14, %v1097_v35  ;;  %v51_v17 = vcombine.high %v31_v14, %v31_v14 }
  0x29   :  { %v1007_v15 = vld [vmem:[#allocation2 + $0x138] sm:$0xff]  }
  0x2a   :  { %862 = vmatpush3.bf16.msra.mxu0 %v966_v25  ;;  %v1008_v18 = vld [vmem:[#allocation2 + $0x1b8] sm:$0xff]   ;;  %v66_v19 = vcombine.high %v58_v16, %v58_v16  ;;  %v65_v20 = vrot.slane %v51_v17, %v1097_v35  ;;  %v80_v21 = vpack.c.bf16 %v58_v16, %v58_v16 }
  0x2b   :  { %884 = vmatpush3.bf16.msra.mxu1 %v967_v26  ;;  %863 = vmatprep.subr.bf16.mxu0 %v968_v27  ;;  %v786_v27 = vld [vmem:[%s1126_s2] ss:$0 sm:$0xff]  ;;  %s1064_s2 = smov [#allocation5]  }
  0x2c   :  { %885 = vmatprep.subr.bf16.mxu1 %v969_v28  ;;  %v81_v22 = vpack.c.bf16 %v66_v19, %v66_v19  ;;  %v67_v23 = vcombine.high %v65_v20, %v65_v20  ;;  %v82_v24 = vpack.c.bf16 %v65_v20, %v65_v20  ;;  %s777_s30 = sshll.u32 %s1064_s2, 4  ;;  %s778_s30 = int_to_ptr.vmem [resolvable:$true] %s777_s30 }
  0x2d   :  { %s1034_s4 = scalar_lea.vmem %s778_s30, 32  ;;  %p1039_p9 = scmp.lt.s32.totalorder %s778_s30, %s778_s30 }
  0x2e   :  { %864 = vmatpush3.bf16.msra.mxu0 %v970_v31  ;;  %v83_v25 = vpack.c.bf16 %v67_v23, %v67_v23  ;;  %p1035_p8 = scmp.ne.s32.totalorder %s778_s30, %s1034_s4  ;;  %p1040_p10 = scmp.lt.s32.totalorder %s1034_s4, %s1034_s4 }
  0x2f   :  { %886 = vmatpush3.bf16.msra.mxu1 %v971_v32  ;;  %865 = vmatprep.subr.bf16.mxu0 %v972_v33 }
  0x30   :  { %887 = vmatprep.subr.bf16.mxu1 %v973_v34  ;;  %p1041_p11 = por %p1040_p10, %p1039_p9 }
  0x32   :  { %866 = vmatpush3.bf16.msra.mxu0 %v974_v36  ;;  %p1042_p12 = pnand %p1041_p11, %p1035_p8 }
  0x33   :  { %888 = vmatpush3.bf16.msra.mxu1 %v975_v37  ;;  %895 = vmatprep.subr.bf16.mxu0 %v977_v41 }
  0x34   :  { %917 = vmatprep.subr.bf16.mxu1 %v978_v42 }
  0x35   :  { %636 = vmatmul.mubr.bf16.vlgmr.msra.gmra.mrb[0].mxu0 %v76_v45 }
  0x36   :  { %896 = vmatpush3.bf16.msra.mxu0 %v979_v48  ;;  %676 = vmatmul.mubr.bf16.vlgmr.msra.gmra.mrb[0].mxu1 %v78_v49 }
  0x37   :  { %897 = vmatprep.subr.bf16.mxu0 %v981_v50  ;;  %918 = vmatpush3.bf16.msra.mxu1 %v980_v52 }
  0x38   :  { %919 = vmatprep.subr.bf16.mxu1 %v982_v53  ;;  %715 = vmatprep.mubr.bf16.mxu0 %v81_v22 }
  0x39   :  { %755 = vmatprep.mubr.bf16.mxu1 %v83_v25 }
  0x3a   :  { %898 = vmatpush3.bf16.msra.mxu0 %v983_v54 }
  0x3b   :  { %899 = vmatprep.subr.bf16.mxu0 %v985_v55  ;;  %920 = vmatpush3.bf16.msra.mxu1 %v984_v56 }
  0x3c   :  { %921 = vmatprep.subr.bf16.mxu1 %v986_v57 }
  0x3e   :  { %900 = vmatpush3.bf16.msra.mxu0 %v987_v58 }
  0x3f   :  { %901 = vmatprep.subr.bf16.mxu0 %v989_v59  ;;  %922 = vmatpush3.bf16.msra.mxu1 %v988_v60 }
  0x40   :  { %923 = vmatprep.subr.bf16.mxu1 %v990_v61 }
  0x42   :  { %902 = vmatpush3.bf16.msra.mxu0 %v991_v62 }
  0x43   :  { %903 = vmatprep.subr.bf16.mxu0 %v993_v63  ;;  %924 = vmatpush3.bf16.msra.mxu1 %v992_v0 }
  0x44   :  { %925 = vmatprep.subr.bf16.mxu1 %v994_v1 }
  0x46   :  { %904 = vmatpush3.bf16.msra.mxu0 %v995_v2 }
  0x47   :  { %905 = vmatprep.subr.bf16.mxu0 %v997_v3  ;;  %926 = vmatpush3.bf16.msra.mxu1 %v996_v4 }
  0x48   :  { %927 = vmatprep.subr.bf16.mxu1 %v998_v5 }
  0x4a   :  { %906 = vmatpush3.bf16.msra.mxu0 %v999_v6 }
  0x4b   :  { %907 = vmatprep.subr.bf16.mxu0 %v1001_v7  ;;  %928 = vmatpush3.bf16.msra.mxu1 %v1000_v8 }
  0x4c   :  { %929 = vmatprep.subr.bf16.mxu1 %v1002_v9 }
  0x4e   :  { %908 = vmatpush3.bf16.msra.mxu0 %v1003_v10 }
  0x4f   :  { %909 = vmatprep.subr.bf16.mxu0 %v1005_v11  ;;  %930 = vmatpush3.bf16.msra.mxu1 %v1004_v12 }
  0x50   :  { %931 = vmatprep.subr.bf16.mxu1 %v1006_v13 }
  0x52   :  { %910 = vmatpush3.bf16.msra.mxu0 %v1007_v15 }
  0x53   :  { %932 = vmatpush3.bf16.msra.mxu1 %v1008_v18 }
  0x55   :  { %716 = vmatmul.mubr.bf16.vlgmr.msra.gmra.mrb[4].mxu0 %v80_v21 }
  0x56   :  { %756 = vmatmul.mubr.bf16.vlgmr.msra.gmra.mrb[4].mxu1 %v82_v24 }
 0x108   :  { %v867_v26 = vpop.f32.mrb[0].mxu0 }
 0x109   :  { %v868_v28 = vpop.f32.mrb[1].mxu0  ;;  %v889_v29 = vpop.f32.mrb[0].mxu1 }
 0x10a   :  { %v869_v30 = vadd.f32 %v868_v28, %v867_v26  ;;  %v870_v31 = vpop.f32.mrb[2].mxu0  ;;  %v890_v32 = vpop.f32.mrb[1].mxu1 }
 0x10b   :  { %v871_v33 = vpop.f32.mrb[3].mxu0  ;;  %v891_v35 = vadd.f32 %v890_v32, %v889_v29  ;;  %v892_v36 = vpop.f32.mrb[2].mxu1 }
 0x10c   :  { %v638_v34 = vadd.f32 %v869_v30, %v786_v27  ;;  %v893_v37 = vpop.f32.mrb[3].mxu1 }
 0x10e   :  { %v678_v38 = vadd.f32 %v891_v35, %v638_v34 }
 0x128   :  { %v911_v39 = vpop.f32.mrb[4].mxu0 }
 0x129   :  { %v912_v40 = vpop.f32.mrb[5].mxu0  ;;  %v933_v41 = vpop.f32.mrb[4].mxu1 }
 0x12a   :  { %v913_v42 = vadd.f32 %v912_v40, %v911_v39  ;;  %v914_v43 = vpop.f32.mrb[6].mxu0  ;;  %v934_v44 = vpop.f32.mrb[5].mxu1 }
 0x12b   :  { %v915_v45 = vpop.f32.mrb[7].mxu0  ;;  %v935_v47 = vadd.f32 %v934_v44, %v933_v41  ;;  %v936_v48 = vpop.f32.mrb[6].mxu1 }
 0x12c   :  { %v718_v46 = vadd.f32 %v913_v42, %v678_v38  ;;  %v937_v49 = vpop.f32.mrb[7].mxu1 }
 0x12e   :  { %v758_v50 = vadd.f32 %v935_v47, %v718_v46 }
 0x130   :  { %v763_v51 = vmul.f32 %v758_v50, %v758_v50 }
 0x132   :  { %v765_v52 = vsel %vm764_vm0, %v763_v51, 0.0 }
 0x133   :  { %766 = vadd.xlane.f32.xlu0 %v765_v52 }
 0x1c0   :  { %v767_v53 = vpop.xlane.xlu0 %766 }
 0x1c1   :  { %1010 = vrsqrt.f32 %v767_v53 }
 0x1cb   :  { %v1011_v54 = vpop.eup %1010 }
 0x1cc   :  { %v769_v55 = vmul.f32 %v1011_v54, %v758_v50 }
 0x1ce   :  { %770 = vst [vmem:[#allocation5] sm:$0x3] %v769_v55 }
 0x1cf   :  { %1045 = shalt.err (!%p1042_p12)
}
 0x1d0   :  { %s1046_s7 = scalar_lea.hbm %s1127_s3, 32 }
 0x1d1   :  { %p1047_p13 = scmp.ne.s32.totalorder %s1127_s3, %s1046_s7  ;;  %p1050_p0 = scmp.lt.u32.totalorder %s1046_s7, %s1127_s3 }
 0x1d3   :  { %p1052_p1 = pnand %p1050_p0, %p1047_p13 }
 0x1d5   :  { %1055 = shalt.err (!%p1052_p1)
}
 0x1d6   :  { %780 = dma.vmem_to_hbm [thread:$0]  %s778_s30, 32, %s1127_s3, [#allocation4]  }
 0x1d7   :  { %1058 = dma.done.wait [#allocation4], 32  }
 0x1d8   :  { %1059 = vsyncadd [#allocation4], 4294967264 }
 0x1d9   :  { %784 = vsyncpa [#allocation3], 1 }
 0x1da   :  { %785 = vsyncpa [#allocation4], 1 }

</bundles_post_ra>
